<compile_context>
chip_gen: v7x
topology: tpu7x:2x2x1
jax: 0.10.0
libtpu: 0.0.40
codegen_flags: <defaults>
</compile_context>

<pallas_src>
import functools

import jax
import jax.numpy as jnp
from jax import lax
from jax.experimental import pallas as pl
from jax.experimental.pallas import tpu as pltpu

SMOOTH_NR = 1e-5  # MONAI DiceLoss defaults
SMOOTH_DR = 1e-5

_LANE = 128
# Per-input logits block target; x2 double-buffering + 4 accumulators + live
# temporaries stays comfortably inside v5e's 16 MiB scoped-VMEM default while
# amortizing the ~0.35 us per-grid-step overhead.
_TARGET_BLOCK_BYTES = 512 * 1024


def _choose_s_tile(S: int, C: int) -> int:
    """Spatial tile width: multiple of 128 lanes, ~512 KiB f32 logits block."""
    s_rounded = pl.cdiv(S, _LANE) * _LANE
    lanes = _TARGET_BLOCK_BYTES // (4 * C)
    lanes = max(_LANE, (lanes // _LANE) * _LANE)
    return int(min(lanes, s_rounded))


def dice_ce_kernel(logits_ref, labels_ref, out_ref,
                   acc_i_ref, acc_g_ref, acc_p_ref, acc_ce_ref,
                   *, padded: bool):
    s = pl.program_id(1)
    n_s = pl.num_programs(1)

    @pl.when(s == 0)
    def _init():
        acc_i_ref[...] = jnp.zeros_like(acc_i_ref)
        acc_g_ref[...] = jnp.zeros_like(acc_g_ref)
        acc_p_ref[...] = jnp.zeros_like(acc_p_ref)
        acc_ce_ref[...] = jnp.zeros_like(acc_ce_ref)

    x = logits_ref[0].astype(jnp.float32)          # (C, S_TILE)
    lab = labels_ref[0]                            # (1, S_TILE) int32

    # Numerically-stable softmax over the class (sublane) axis.
    m = jnp.max(x, axis=0, keepdims=True)          # (1, S_TILE)
    z = x - m
    e = jnp.exp(z)                                 # EUP
    denom = jnp.sum(e, axis=0, keepdims=True)      # (1, S_TILE)
    # EUP reciprocal (frees the VPU divide path) + one Newton step -> ~f32 exact.
    recip = pl.reciprocal(denom, approx=True)
    recip = recip * (2.0 - denom * recip)
    sm = e * recip                                 # softmax probabilities (C, S_TILE)

    # One-hot of labels along the class axis.
    class_ids = lax.broadcasted_iota(jnp.int32, x.shape, 0)
    onehot = (class_ids == lab).astype(jnp.float32)

    # Per-lane partial sums; cross-lane reductions deferred to the last tile.
    acc_i_ref[...] += onehot * sm
    acc_g_ref[...] += onehot
    if padded:
        # Padded tail pixels carry label -1: zero one-hot already kills their
        # inter/gsum/CE contributions; mask them out of the prediction sum too.
        acc_p_ref[...] += sm * (lab >= 0).astype(jnp.float32)
    else:
        acc_p_ref[...] += sm
    # CE needs only the target-class log-prob: -log p_t = log(denom) - z_t.
    # (no (C, S) log-softmax materialized)
    acc_ce_ref[...] += onehot * (jnp.log(denom) - z)

    @pl.when(s == n_s - 1)
    def _finalize():
        num_c = acc_i_ref.shape[0]
        inter = jnp.sum(acc_i_ref[...], axis=-1, keepdims=True)   # (C, 1)
        gsum = jnp.sum(acc_g_ref[...], axis=-1, keepdims=True)    # (C, 1)
        psum = jnp.sum(acc_p_ref[...], axis=-1, keepdims=True)    # (C, 1)
        ce = jnp.sum(acc_ce_ref[...], keepdims=True)              # (1, 1)
        # Pack [inter | gsum | psum | ce] into one lane-dense (C, 128) block:
        # a single store + one HBM writeback per batch element.
        lane = lax.broadcasted_iota(jnp.int32, (num_c, _LANE), 1)
        packed = (jnp.where(lane == 0, inter, 0.0)
                  + jnp.where(lane == 1, gsum, 0.0)
                  + jnp.where(lane == 2, psum, 0.0)
                  + jnp.where(lane == 3, ce, 0.0))
        out_ref[0] = packed


def dice_ce_loss(y_pred, y_true):
    """y_pred: (B, C, H, W) float logits (NCHW, like PyTorch).
       y_true: (B, 1, H, W) integer class labels."""
    B, C, H, W = y_pred.shape
    S = H * W
    s_tile = _choose_s_tile(S, C)
    n_s = int(pl.cdiv(S, s_tile))
    s_pad = n_s * s_tile
    padded = s_pad != S

    logits = y_pred.reshape(B, C, S)
    labels = y_true.reshape(B, 1, S).astype(jnp.int32)
    if padded:
        logits = jnp.pad(logits, ((0, 0), (0, 0), (0, s_pad - S)))
        labels = jnp.pad(labels, ((0, 0), (0, 0), (0, s_pad - S)),
                         constant_values=-1)

    kernel = functools.partial(dice_ce_kernel, padded=padded)

    packed = pl.pallas_call(
        kernel,
        out_shape=jax.ShapeDtypeStruct((B, C, _LANE), jnp.float32),
        grid_spec=pltpu.PrefetchScalarGridSpec(
            num_scalar_prefetch=0,
            grid=(B, n_s),
            in_specs=[
                pl.BlockSpec((1, C, s_tile), lambda b, s: (b, 0, s)),
                pl.BlockSpec((1, 1, s_tile), lambda b, s: (b, 0, s)),
            ],
            out_specs=pl.BlockSpec((1, C, _LANE), lambda b, s: (b, 0, 0)),
            scratch_shapes=[
                pltpu.VMEM((C, s_tile), jnp.float32),  # intersection partials
                pltpu.VMEM((C, s_tile), jnp.float32),  # ground-truth-sum partials
                pltpu.VMEM((C, s_tile), jnp.float32),  # prediction-sum partials
                pltpu.VMEM((C, s_tile), jnp.float32),  # CE (-log p_target) partials
            ],
        ),
        compiler_params=pltpu.CompilerParams(
            dimension_semantics=("parallel", "arbitrary")),
    )(logits, labels)

    inter = packed[:, :, 0]     # (B, C)
    gsum = packed[:, :, 1]
    psum = packed[:, :, 2]
    ce_sum = packed[:, 0, 3]    # (B,)

    # MONAI DiceLoss (include_background=True, reduction="mean"):
    #   f[b, c] = 1 - (2*I + eps) / (G + P + eps); mean over (B, C)
    dice_per = 1.0 - (2.0 * inter + SMOOTH_NR) / (gsum + psum + SMOOTH_DR)
    dice_loss = jnp.mean(dice_per)

    # nn.CrossEntropyLoss default reduction="mean" over all (B, H, W) pixels.
    ce_loss = jnp.sum(ce_sum) / (B * S)

    return dice_loss + ce_loss


if __name__ == "__main__":
    key = jax.random.PRNGKey(0)
    k1, k2 = jax.random.split(key)
    B, C, H, W = 2, 4, 16, 16
    y_pred = jax.random.normal(k1, (B, C, H, W), dtype=jnp.float32)
    y_true = jax.random.randint(k2, (B, 1, H, W), 0, C, dtype=jnp.int32)

    loss = jax.jit(dice_ce_loss)(y_pred, y_true)
    jax.block_until_ready(loss)
    print("KERNEL_OK")
</pallas_src>

<mosaic_0001>
module attributes {stable_mosaic.version = 11 : i64} {
  func.func @dice_ce_kernel(%arg0: i32, %arg1: i32, %arg2: memref<1x4x256xf32, #tpu.memory_space<vmem>>, %arg3: memref<1x1x256xi32, #tpu.memory_space<vmem>>, %arg4: memref<1x4x128xf32, #tpu.memory_space<vmem>>, %arg5: memref<4x256xf32, #tpu.memory_space<vmem>>, %arg6: memref<4x256xf32, #tpu.memory_space<vmem>>, %arg7: memref<4x256xf32, #tpu.memory_space<vmem>>, %arg8: memref<4x256xf32, #tpu.memory_space<vmem>>) attributes {dimension_semantics = [#tpu.dimension_semantics<parallel>, #tpu.dimension_semantics<arbitrary>], iteration_bounds = array<i64: 2, 1>, scalar_prefetch = 0 : i64, scratch_operands = 4 : i64, tpu.core_type = #tpu.core_type<tc>, window_params = [{transform_indices = @transform_0, window_bounds = array<i64: 1, 4, 256>}, {transform_indices = @transform_1, window_bounds = array<i64: 1, 1, 256>}, {transform_indices = @transform_2, window_bounds = array<i64: 1, 4, 128>}]} {
    %c0_i32 = arith.constant 0 : i32
    %0 = arith.cmpi eq, %arg1, %c0_i32 : i32
    %1 = arith.extui %0 : i1 to i32
    %c0_i32_0 = arith.constant 0 : i32
    %2 = arith.cmpi ne, %1, %c0_i32_0 : i32
    scf.if %2 {
      %cst_26 = arith.constant 0.000000e+00 : f32
      %46 = vector.broadcast %cst_26 : f32 to vector<4x256xf32>
      %c0_27 = arith.constant 0 : index
      %c0_28 = arith.constant 0 : index
      %47 = vector.load %arg5[%c0_27, %c0_28] : memref<4x256xf32, #tpu.memory_space<vmem>>, vector<4x256xf32>
      tpu.vector_store %arg5[%c0_27, %c0_28], %46 {strides = array<i32>} : memref<4x256xf32, #tpu.memory_space<vmem>>, vector<4x256xf32>,
      %cst_29 = arith.constant 0.000000e+00 : f32
      %48 = vector.broadcast %cst_29 : f32 to vector<4x256xf32>
      %c0_30 = arith.constant 0 : index
      %c0_31 = arith.constant 0 : index
      %49 = vector.load %arg6[%c0_30, %c0_31] : memref<4x256xf32, #tpu.memory_space<vmem>>, vector<4x256xf32>
      tpu.vector_store %arg6[%c0_30, %c0_31], %48 {strides = array<i32>} : memref<4x256xf32, #tpu.memory_space<vmem>>, vector<4x256xf32>,
      %cst_32 = arith.constant 0.000000e+00 : f32
      %50 = vector.broadcast %cst_32 : f32 to vector<4x256xf32>
      %c0_33 = arith.constant 0 : index
      %c0_34 = arith.constant 0 : index
      %51 = vector.load %arg7[%c0_33, %c0_34] : memref<4x256xf32, #tpu.memory_space<vmem>>, vector<4x256xf32>
      tpu.vector_store %arg7[%c0_33, %c0_34], %50 {strides = array<i32>} : memref<4x256xf32, #tpu.memory_space<vmem>>, vector<4x256xf32>,
      %cst_35 = arith.constant 0.000000e+00 : f32
      %52 = vector.broadcast %cst_35 : f32 to vector<4x256xf32>
      %c0_36 = arith.constant 0 : index
      %c0_37 = arith.constant 0 : index
      %53 = vector.load %arg8[%c0_36, %c0_37] : memref<4x256xf32, #tpu.memory_space<vmem>>, vector<4x256xf32>
      tpu.vector_store %arg8[%c0_36, %c0_37], %52 {strides = array<i32>} : memref<4x256xf32, #tpu.memory_space<vmem>>, vector<4x256xf32>,
    } else {
    }
    %c0 = arith.constant 0 : index
    %c0_1 = arith.constant 0 : index
    %c0_2 = arith.constant 0 : index
    %3 = vector.load %arg2[%c0, %c0_1, %c0_2] : memref<1x4x256xf32, #tpu.memory_space<vmem>>, vector<1x4x256xf32>
    %4 = vector.shape_cast %3 : vector<1x4x256xf32> to vector<4x256xf32>
    %c0_3 = arith.constant 0 : index
    %c0_4 = arith.constant 0 : index
    %c0_5 = arith.constant 0 : index
    %5 = vector.load %arg3[%c0_3, %c0_4, %c0_5] : memref<1x1x256xi32, #tpu.memory_space<vmem>>, vector<1x1x256xi32>
    %6 = vector.shape_cast %5 : vector<1x1x256xi32> to vector<1x256xi32>
    %cst = arith.constant dense<0xFF800000> : vector<256xf32>
    %7 = vector.multi_reduction <maximumf>, %4, %cst [0] : vector<4x256xf32> to vector<256xf32>
    %8 = vector.shape_cast %7 : vector<256xf32> to vector<1x256xf32>
    %9 = vector.broadcast %8 : vector<1x256xf32> to vector<4x256xf32>
    %10 = arith.subf %4, %9 : vector<4x256xf32>
    %11 = math.exp %10 : vector<4x256xf32>
    %cst_6 = arith.constant dense<0.000000e+00> : vector<256xf32>
    %12 = vector.multi_reduction <add>, %11, %cst_6 [0] : vector<4x256xf32> to vector<256xf32>
    %13 = vector.shape_cast %12 : vector<256xf32> to vector<1x256xf32>
    %14 = tpu.reciprocal %13 {approx = true} : vector<1x256xf32> -> vector<1x256xf32>
    %15 = arith.mulf %13, %14 : vector<1x256xf32>
    %cst_7 = arith.constant 2.000000e+00 : f32
    %16 = vector.broadcast %cst_7 : f32 to vector<1x256xf32>
    %17 = arith.subf %16, %15 : vector<1x256xf32>
    %18 = arith.mulf %14, %17 : vector<1x256xf32>
    %19 = vector.broadcast %18 : vector<1x256xf32> to vector<4x256xf32>
    %20 = arith.mulf %11, %19 : vector<4x256xf32>
    %21 = tpu.iota {dimensions = array<i32: 0>} : vector<4x256xi32>
    %22 = vector.broadcast %6 : vector<1x256xi32> to vector<4x256xi32>
    %23 = arith.cmpi eq, %21, %22 : vector<4x256xi32>
    %24 = arith.extui %23 : vector<4x256xi1> to vector<4x256xi32>
    %25 = arith.sitofp %24 : vector<4x256xi32> to vector<4x256xf32>
    %c0_8 = arith.constant 0 : index
    %c0_9 = arith.constant 0 : index
    %26 = vector.load %arg5[%c0_8, %c0_9] : memref<4x256xf32, #tpu.memory_space<vmem>>, vector<4x256xf32>
    %27 = arith.mulf %25, %20 : vector<4x256xf32>
    %28 = arith.addf %26, %27 : vector<4x256xf32>
    %c0_10 = arith.constant 0 : index
    %c0_11 = arith.constant 0 : index
    %29 = vector.load %arg5[%c0_10, %c0_11] : memref<4x256xf32, #tpu.memory_space<vmem>>, vector<4x256xf32>
    tpu.vector_store %arg5[%c0_10, %c0_11], %28 {strides = array<i32>} : memref<4x256xf32, #tpu.memory_space<vmem>>, vector<4x256xf32>,
    %c0_12 = arith.constant 0 : index
    %c0_13 = arith.constant 0 : index
    %30 = vector.load %arg6[%c0_12, %c0_13] : memref<4x256xf32, #tpu.memory_space<vmem>>, vector<4x256xf32>
    %31 = arith.addf %30, %25 : vector<4x256xf32>
    %c0_14 = arith.constant 0 : index
    %c0_15 = arith.constant 0 : index
    %32 = vector.load %arg6[%c0_14, %c0_15] : memref<4x256xf32, #tpu.memory_space<vmem>>, vector<4x256xf32>
    tpu.vector_store %arg6[%c0_14, %c0_15], %31 {strides = array<i32>} : memref<4x256xf32, #tpu.memory_space<vmem>>, vector<4x256xf32>,
    %c0_16 = arith.constant 0 : index
    %c0_17 = arith.constant 0 : index
    %33 = vector.load %arg7[%c0_16, %c0_17] : memref<4x256xf32, #tpu.memory_space<vmem>>, vector<4x256xf32>
    %34 = arith.addf %33, %20 : vector<4x256xf32>
    %c0_18 = arith.constant 0 : index
    %c0_19 = arith.constant 0 : index
    %35 = vector.load %arg7[%c0_18, %c0_19] : memref<4x256xf32, #tpu.memory_space<vmem>>, vector<4x256xf32>
    tpu.vector_store %arg7[%c0_18, %c0_19], %34 {strides = array<i32>} : memref<4x256xf32, #tpu.memory_space<vmem>>, vector<4x256xf32>,
    %c0_20 = arith.constant 0 : index
    %c0_21 = arith.constant 0 : index
    %36 = vector.load %arg8[%c0_20, %c0_21] : memref<4x256xf32, #tpu.memory_space<vmem>>, vector<4x256xf32>
    %37 = math.log %13 : vector<1x256xf32>
    %38 = vector.broadcast %37 : vector<1x256xf32> to vector<4x256xf32>
    %39 = arith.subf %38, %10 : vector<4x256xf32>
    %40 = arith.mulf %25, %39 : vector<4x256xf32>
    %41 = arith.addf %36, %40 : vector<4x256xf32>
    %c0_22 = arith.constant 0 : index
    %c0_23 = arith.constant 0 : index
    %42 = vector.load %arg8[%c0_22, %c0_23] : memref<4x256xf32, #tpu.memory_space<vmem>>, vector<4x256xf32>
    tpu.vector_store %arg8[%c0_22, %c0_23], %41 {strides = array<i32>} : memref<4x256xf32, #tpu.memory_space<vmem>>, vector<4x256xf32>,
    %c0_i32_24 = arith.constant 0 : i32
    %43 = arith.cmpi eq, %arg1, %c0_i32_24 : i32
    %44 = arith.extui %43 : i1 to i32
    %c0_i32_25 = arith.constant 0 : i32
    %45 = arith.cmpi ne, %44, %c0_i32_25 : i32
    scf.if %45 {
      %c0_26 = arith.constant 0 : index
      %c0_27 = arith.constant 0 : index
      %46 = vector.load %arg5[%c0_26, %c0_27] : memref<4x256xf32, #tpu.memory_space<vmem>>, vector<4x256xf32>
      %cst_28 = arith.constant dense<0.000000e+00> : vector<4xf32>
      %47 = vector.multi_reduction <add>, %46, %cst_28 [1] : vector<4x256xf32> to vector<4xf32>
      %48 = vector.shape_cast %47 : vector<4xf32> to vector<4x1xf32>
      %c0_29 = arith.constant 0 : index
      %c0_30 = arith.constant 0 : index
      %49 = vector.load %arg6[%c0_29, %c0_30] : memref<4x256xf32, #tpu.memory_space<vmem>>, vector<4x256xf32>
      %cst_31 = arith.constant dense<0.000000e+00> : vector<4xf32>
      %50 = vector.multi_reduction <add>, %49, %cst_31 [1] : vector<4x256xf32> to vector<4xf32>
      %51 = vector.shape_cast %50 : vector<4xf32> to vector<4x1xf32>
      %c0_32 = arith.constant 0 : index
      %c0_33 = arith.constant 0 : index
      %52 = vector.load %arg7[%c0_32, %c0_33] : memref<4x256xf32, #tpu.memory_space<vmem>>, vector<4x256xf32>
      %cst_34 = arith.constant dense<0.000000e+00> : vector<4xf32>
      %53 = vector.multi_reduction <add>, %52, %cst_34 [1] : vector<4x256xf32> to vector<4xf32>
      %54 = vector.shape_cast %53 : vector<4xf32> to vector<4x1xf32>
      %c0_35 = arith.constant 0 : index
      %c0_36 = arith.constant 0 : index
      %55 = vector.load %arg8[%c0_35, %c0_36] : memref<4x256xf32, #tpu.memory_space<vmem>>, vector<4x256xf32>
      %56 = vector.shape_cast %55 : vector<4x256xf32> to vector<1x4x256xf32>
      %cst_37 = arith.constant dense<0.000000e+00> : vector<1xf32>
      %57 = vector.multi_reduction <add>, %56, %cst_37 [1, 2] : vector<1x4x256xf32> to vector<1xf32>
      %58 = vector.shape_cast %57 : vector<1xf32> to vector<1x1x1xf32>
      %59 = vector.extract %58[0, 0, 0] : f32 from vector<1x1x1xf32>
      %60 = vector.broadcast %59 : f32 to vector<1x1xf32>
      %61 = tpu.iota {dimensions = array<i32: 1>} : vector<4x128xi32>
      %c0_i32_38 = arith.constant 0 : i32
      %62 = vector.broadcast %c0_i32_38 : i32 to vector<4x128xi32>
      %63 = arith.cmpi eq, %61, %62 : vector<4x128xi32>
      %cst_39 = arith.constant 0.000000e+00 : f32
      %64 = vector.shape_cast %48 : vector<4x1xf32> to vector<4x1xf32>
      %65 = vector.broadcast %64 : vector<4x1xf32> to vector<4x128xf32>
      %66 = vector.broadcast %cst_39 : f32 to vector<4x128xf32>
      %67 = arith.select %63, %65, %66 : vector<4x128xi1>, vector<4x128xf32>
      %c1_i32 = arith.constant 1 : i32
      %68 = vector.broadcast %c1_i32 : i32 to vector<4x128xi32>
      %69 = arith.cmpi eq, %61, %68 : vector<4x128xi32>
      %cst_40 = arith.constant 0.000000e+00 : f32
      %70 = vector.shape_cast %51 : vector<4x1xf32> to vector<4x1xf32>
      %71 = vector.broadcast %70 : vector<4x1xf32> to vector<4x128xf32>
      %72 = vector.broadcast %cst_40 : f32 to vector<4x128xf32>
      %73 = arith.select %69, %71, %72 : vector<4x128xi1>, vector<4x128xf32>
      %74 = arith.addf %67, %73 : vector<4x128xf32>
      %c2_i32 = arith.constant 2 : i32
      %75 = vector.broadcast %c2_i32 : i32 to vector<4x128xi32>
      %76 = arith.cmpi eq, %61, %75 : vector<4x128xi32>
      %cst_41 = arith.constant 0.000000e+00 : f32
      %77 = vector.shape_cast %54 : vector<4x1xf32> to vector<4x1xf32>
      %78 = vector.broadcast %77 : vector<4x1xf32> to vector<4x128xf32>
      %79 = vector.broadcast %cst_41 : f32 to vector<4x128xf32>
      %80 = arith.select %76, %78, %79 : vector<4x128xi1>, vector<4x128xf32>
      %81 = arith.addf %74, %80 : vector<4x128xf32>
      %c3_i32 = arith.constant 3 : i32
      %82 = vector.broadcast %c3_i32 : i32 to vector<4x128xi32>
      %83 = arith.cmpi eq, %61, %82 : vector<4x128xi32>
      %cst_42 = arith.constant 0.000000e+00 : f32
      %84 = vector.shape_cast %60 : vector<1x1xf32> to vector<1x1xf32>
      %85 = vector.broadcast %84 : vector<1x1xf32> to vector<4x128xf32>
      %86 = vector.broadcast %cst_42 : f32 to vector<4x128xf32>
      %87 = arith.select %83, %85, %86 : vector<4x128xi1>, vector<4x128xf32>
      %88 = arith.addf %81, %87 : vector<4x128xf32>
      %c0_43 = arith.constant 0 : index
      %c0_44 = arith.constant 0 : index
      %c0_45 = arith.constant 0 : index
      %89 = vector.load %arg4[%c0_43, %c0_44, %c0_45] : memref<1x4x128xf32, #tpu.memory_space<vmem>>, vector<1x4x128xf32>
      %90 = vector.shape_cast %89 : vector<1x4x128xf32> to vector<4x128xf32>
      %91 = vector.shape_cast %88 : vector<4x128xf32> to vector<1x4x128xf32>
      tpu.vector_store %arg4[%c0_43, %c0_44, %c0_45], %91 {strides = array<i32>} : memref<1x4x128xf32, #tpu.memory_space<vmem>>, vector<1x4x128xf32>,
    } else {
    }
    return
  }
  func.func @transform_0(%arg0: i32, %arg1: i32) -> (i32, i32, i32) {
    %c0_i32 = arith.constant 0 : i32
    %c0_i32_0 = arith.constant 0 : i32
    return %arg0, %c0_i32, %arg1 : i32, i32, i32
  }
  func.func @transform_1(%arg0: i32, %arg1: i32) -> (i32, i32, i32) {
    %c0_i32 = arith.constant 0 : i32
    %c0_i32_0 = arith.constant 0 : i32
    return %arg0, %c0_i32, %arg1 : i32, i32, i32
  }
  func.func @transform_2(%arg0: i32, %arg1: i32) -> (i32, i32, i32) {
    %c0_i32 = arith.constant 0 : i32
    %c0_i32_0 = arith.constant 0 : i32
    %c0_i32_1 = arith.constant 0 : i32
    return %arg0, %c0_i32, %c0_i32_0 : i32, i32, i32
  }
}

</mosaic_0001>

<bundles_post_ra>
// kernel: dice_ce_loss.1
= control target key start
LH: loop header
LB: loop body
LE: loop exit
PB: predicated region body
PF: predicated region fallthrough
CT: control target
= control target key end

     0   :  { %s562_s9 = smov 0   ;;  %s564_s10 = smov 0   ;;  %s629_s0 = inlined_call_operand.vmem [shape: f32[2,4,256], index: 0, kind: input, shape index: {}]   ;;  %s630_s1 = inlined_call_operand.vmem [shape: s32[2,1,256], index: 1, kind: input, shape index: {}]   ;;  %s631_s2 = inlined_call_operand.vmem [shape: f32[2,4,128], index: 2, kind: output, shape index: {}]  }
   0x1   :  { %s566_s11 = smov 0  }
   0x2 LB: > { %s24_s12 = sadd.s32 1, %s540_s10  ;;  %p471_p0 = scmp.ge.s32.totalorder %s544_s11, 1  ;;  %s544_s11 = sphi %s566_s11, %s12_s11   ;;  %s540_s10 = sphi %s564_s10, %s633_s10   ;;  %s536_s9 = sphi %s562_s9, %s632_s9  }
   0x3   : > { %p26_p1 = scmp.ge.s32.totalorder %s24_s12, 2  ;;  %p147_p2 = scmp.lt.s32.totalorder %s544_s11, 3 }
   0x5   : > { %s635_s12 = smov (%p26_p1, %s24_s12), 0  ;;  %p148_p3 = pnand %p471_p0, %p147_p2 }
   0x6   : > { %p181_p4 = scmp.lt.s32.totalorder (!%p148_p3), %s536_s9, 1  ;;  %v268_v0 = vlaneseq (!%p148_p3)  ;;  %vm216_vm0 = vcmask (!%p148_p3), 1043456   ;;  %v546_v14 = vmov (!%p148_p3), 0.0  }
   0x7   : > { %151 = sbr.rel (%p148_p3) target bundleno = 296 (0x128), region = 28 }
   0x8   : > { %v269_v1 = vshrl.u32 (!%p148_p3), %v268_v0, 7 }
   0xa   : > { %v272_v2 = vsub.s32 (!%p148_p3), 0, %v269_v1  ;;  %v276_v3 = vsub.s32 (!%p148_p3), 1, %v269_v1 }
   0xe   : > { %s637_s9 = smov (!%p181_p4, %s536_s9), 1 }
   0xf   : > { %s480_s13 = sshll.u32 %s637_s9, 3  ;;  %s474_s14 = sshll.u32 %s637_s9, 1 }
  0x10   : > { %s188_s17 = scalar_lea.vmem %s629_s0, %s480_s13  ;;  %s197_s20 = scalar_lea.vmem %s630_s1, %s474_s14 }
  0x11   : > { %v211_v4 = vld [vmem:[%s188_s17] sm:$0xff]  ;;  %s475_s21 = sshll.u32 %s637_s9, 2 }
  0x12   : > { %v212_v5 = vld [vmem:[%s197_s20] sm:$0x3]  ;;  %v214_v6 = vcombine.high %v211_v4, %v211_v4  ;;  %v217_v7 = vsel %vm216_vm0, %v211_v4, -inf  ;;  %s202_s25 = scalar_lea.vmem %s631_s2, %s475_s21 }
  0x13   : > { %v273_v8 = vrot.slane %v212_v5, %v272_v2  ;;  %v277_v9 = vrot.slane %v212_v5, %v276_v3  ;;  %v218_v10 = vrot.slane %v217_v7, 4 }
  0x14   : > { %v224_v11 = vsel %vm216_vm0, %v214_v6, -inf }
  0x15   : > { %vm278_vm1 = vcmp.eq.s32.totalorder %v269_v1, %v273_v8  ;;  %vm279_vm2 = vcmp.eq.s32.totalorder %v269_v1, %v277_v9  ;;  %v219_v12 = vmax.f32 %v217_v7, %v218_v10  ;;  %v225_v13 = vrot.slane %v224_v11, 4 }
  0x16   : > { %v593_v15 = vsel %vm278_vm1, 1.0, %v546_v14  ;;  %v595_v16 = vsel %vm279_vm2, 1.0, %v546_v14 }
  0x17   : > { %v299_v17 = vcombine.low %v593_v15, %v595_v16  ;;  %v482_v18 = vcombine.low %v595_v16, %v595_v16  ;;  %v220_v19 = vrot.slane %v219_v12, 2  ;;  %v226_v20 = vmax.f32 %v224_v11, %v225_v13 }
  0x19   : > { %v340_v21 = vsel %vm216_vm0, %v299_v17, 0.0  ;;  %v341_v22 = vsel %vm216_vm0, %v482_v18, 0.0  ;;  %v221_v23 = vmax.f32 %v219_v12, %v220_v19  ;;  %v227_v24 = vrot.slane %v226_v20, 2 }
  0x1a   : > { %v342_v25 = vadd.f32 %v341_v22, %v340_v21 }
  0x1b   : > { %v222_v26 = vrot.slane %v221_v23, 1  ;;  %v228_v27 = vmax.f32 %v226_v20, %v227_v24 }
  0x1c   : > { %343 = vadd.xlane.f32.xlu1 %v342_v25 }
  0x1d   : > { %v223_v28 = vmax.f32 %v221_v23, %v222_v26  ;;  %v229_v29 = vrot.slane %v228_v27, 1 }
  0x1f   : > { %v230_v30 = vmax.f32 %v228_v27, %v229_v29  ;;  %v371_v29 = vand.u32 127, %v268_v0 }
  0x21   : > { %v233_v31 = vcombine.low %v223_v28, %v230_v30  ;;  %vm374_vm3 = vcmp.eq.s32.totalorder %v371_v29, 1  ;;  %vm372_vm4 = vcmp.eq.s32.totalorder %v371_v29, 0  ;;  %vm377_vm5 = vcmp.eq.s32.totalorder %v371_v29, 2 }
  0x22   : > { %vm380_vm6 = vcmp.eq.s32.totalorder %v371_v29, 3 }
  0x23   : > { %v235_v32 = vsub.f32 %v211_v4, %v233_v31 }
  0x25   : > { %v236_v33 = vmul.f32 1.442695, %v235_v32  ;;  %v312_v52 = vcombine.high %v235_v32, %v235_v32 }
  0x27   : > { %512 = vpow2.f32 %v236_v33 }
  0x31   : > { %v513_v34 = vpop.eup %512 }
  0x32   : > { %v239_v35 = vcombine.high %v513_v34, %v513_v34  ;;  %v241_v36 = vsel %vm216_vm0, %v513_v34, 0.0 }
  0x33   : > { %v242_v37 = vrot.slane %v241_v36, 4 }
  0x34   : > { %v248_v38 = vsel %vm216_vm0, %v239_v35, 0.0 }
  0x35   : > { %v243_v39 = vadd.f32 %v242_v37, %v241_v36  ;;  %v249_v40 = vrot.slane %v248_v38, 4 }
  0x37   : > { %v244_v41 = vrot.slane %v243_v39, 2  ;;  %v250_v42 = vadd.f32 %v249_v40, %v248_v38 }
  0x39   : > { %v245_v43 = vadd.f32 %v244_v41, %v243_v39  ;;  %v251_v44 = vrot.slane %v250_v42, 2 }
  0x3b   : > { %v246_v45 = vrot.slane %v245_v43, 1  ;;  %v252_v46 = vadd.f32 %v251_v44, %v250_v42 }
  0x3d   : > { %v247_v47 = vadd.f32 %v246_v45, %v245_v43  ;;  %v253_v48 = vrot.slane %v252_v46, 1 }
  0x3f   : > { %v254_v49 = vadd.f32 %v253_v48, %v252_v46  ;;  %514 = vrcp.f32 %v247_v47 }
  0x40   : > { %516 = vlog2.f32 %v247_v47 }
  0x41   : > { %518 = vlog2.f32 %v254_v49 }
  0x42   : > { %520 = vrcp.f32 %v254_v49 }
  0x49   : > { %v515_v50 = vpop.eup %514 }
  0x4a   : > { %v517_v51 = vpop.eup %516  ;;  %v257_v53 = vmul.f32 %v515_v50, %v247_v47 }
  0x4b   : > { %v519_v54 = vpop.eup %518  ;;  %v308_v55 = vmul.f32 0.6931472, %v517_v51 }
  0x4c   : > { %v521_v56 = vpop.eup %520  ;;  %v310_v57 = vmul.f32 0.6931472, %v519_v54  ;;  %v259_v58 = vsub.f32 2.0, %v257_v53 }
  0x4d   : > { %v314_v59 = vsub.f32 %v308_v55, %v235_v32  ;;  %v258_v60 = vmul.f32 %v521_v56, %v254_v49 }
  0x4e   : > { %v315_v61 = vsub.f32 %v310_v57, %v312_v52  ;;  %v261_v1 = vmul.f32 %v515_v50, %v259_v58 }
  0x4f   : > { %v316_v62 = vmul.f32 %v593_v15, %v314_v59  ;;  %v260_v63 = vsub.f32 2.0, %v258_v60 }
  0x50   : > { %v317_v2 = vmul.f32 %v595_v16, %v315_v61 }
  0x51   : > { %v262_v3 = vmul.f32 %v521_v56, %v260_v63 }
  0x52   : > { %v320_v4 = vcombine.low %v316_v62, %v317_v2  ;;  %v483_v5 = vcombine.low %v317_v2, %v317_v2 }
  0x53   : > { %v265_v6 = vcombine.low %v261_v1, %v262_v3 }
  0x54   : > { %v358_v7 = vsel %vm216_vm0, %v320_v4, 0.0  ;;  %v359_v8 = vsel %vm216_vm0, %v483_v5, 0.0 }
  0x55   : > { %v360_v9 = vadd.f32 %v359_v8, %v358_v7  ;;  %v267_v10 = vmul.f32 %v513_v34, %v265_v6 }
  0x57   : > { %361 = vadd.xlane.f32.xlu0 %v360_v9  ;;  %v286_v11 = vcombine.high %v267_v10, %v267_v10  ;;  %v288_v12 = vmul.f32 %v593_v15, %v267_v10  ;;  %v349_v13 = vsel %vm216_vm0, %v267_v10, 0.0 }
  0x59   : > { %v289_v14 = vmul.f32 %v595_v16, %v286_v11  ;;  %v350_v17 = vsel %vm216_vm0, %v286_v11, 0.0 }
  0x5a   : > { %v351_v18 = vadd.f32 %v350_v17, %v349_v13 }
  0x5b   : > { %v292_v19 = vcombine.low %v288_v12, %v289_v14  ;;  %v481_v20 = vcombine.low %v289_v14, %v289_v14 }
  0x5c   : > { %352 = vadd.xlane.f32.xlu1 %v351_v18 }
  0x5d   : > { %v331_v21 = vsel %vm216_vm0, %v292_v19, 0.0  ;;  %v332_v22 = vsel %vm216_vm0, %v481_v20, 0.0 }
  0x5e   : > { %v333_v23 = vadd.f32 %v332_v22, %v331_v21 }
  0x60   : > { %334 = vadd.xlane.f32.xlu0 %v333_v23 }
  0xa9   : > { %v344_v30 = vpop.xlane.xlu1 %343 }
  0xaa   : > { %v375_v32 = vsel %vm374_vm3, %v344_v30, 0.0 }
  0xe4   : > { %v362_v24 = vpop.xlane.xlu0 %361 }
  0xe5   : > { %v363_v25 = vrot.slane %v362_v24, 4 }
  0xe7   : > { %v364_v26 = vadd.f32 %v363_v25, %v362_v24 }
  0xe9   : > { %v365_v15 = vrot.slane %v364_v26, 2  ;;  %v353_v34 = vpop.xlane.xlu1 %352 }
  0xea   : > { %v378_v36 = vsel %vm377_vm5, %v353_v34, 0.0 }
  0xeb   : > { %v366_v27 = vadd.f32 %v365_v15, %v364_v26 }
  0xed   : > { %v367_v28 = vrot.slane %v366_v27, 1  ;;  %v335_v31 = vpop.xlane.xlu0 %334 }
  0xee   : > { %v373_v33 = vsel %vm372_vm4, %v335_v31, 0.0 }
  0xef   : > { %v368_v16 = vadd.f32 %v367_v28, %v366_v27  ;;  %v376_v35 = vadd.f32 %v375_v32, %v373_v33 }
  0xf1   : > { %484 = vpush %v368_v16  ;;  %v379_v37 = vadd.f32 %v378_v36, %v376_v35 }
 0x122   : > { %s485_s22 = spop %484 }
 0x123   : > { %v381_v38 = vstv %s485_s22 }
 0x124   : > { %v382_v0 = vsel %vm380_vm6, %v381_v38, 0.0 }
 0x125   : > { %v383_v39 = vadd.f32 %v382_v0, %v379_v37 }
 0x127   : > { %384 = vst [vmem:[%s202_s25] sm:$0xf] %v383_v39 }
 0x128 PF: > { %s12_s11 = sadd.s32 1, %s544_s11   ;;  %s632_s9 = smov %s540_s10 }
 0x129   : > { %p9_p5 = scmp.ge.s32.totalorder %s12_s11, 4   ;;  %s633_s10 = smov %s635_s12 }
 0x12b   :  { %11 = sbr.rel (!%p9_p5) target bundleno = 2 (0x2), region = 69 }

</bundles_post_ra>
